<compile_context>
chip_gen: v5e
topology: v5e:2x2
jax: 0.10.0
libtpu: 0.0.40
codegen_flags: <defaults>
</compile_context>

<pallas_src>
import jax
import jax.numpy as jnp
from jax.experimental import pallas as pl
from jax.experimental.pallas import tpu as pltpu

_LANE = 128
_F32 = 4  # bytes per float32


def _round_up(v, m):
    return ((v + m - 1) // m) * m


def _round_down(v, m):
    return (v // m) * m


def _vmem_capacity_bytes(default=64 << 20):
    """Per-core VMEM capacity; conservative (v7x 64 MiB) fallback."""
    try:
        cap = getattr(pltpu.get_tpu_info(), "vmem_capacity_bytes", None)
        return int(cap) if cap else default
    except Exception:
        return default


def _pick_batch_tile(B, D, out_cols, fixed_bytes, budget,
                     target_x_bytes=4 << 20):
    """Byte-sized, lane-aligned batch tile (~4 MiB x tile), VMEM-budgeted."""
    # tb-scaled VMEM: double-buffered x tile + double-buffered out tile.
    per_row = 2 * D * _F32 + 2 * out_cols * _F32
    tb = max(_LANE, _round_down(target_x_bytes // (D * _F32), _LANE))
    avail = max(budget - fixed_bytes, _LANE * per_row)
    tb = min(tb, max(_LANE, _round_down(avail // per_row, _LANE)))
    if tb >= B:
        if B >= 2 * _LANE:
            # Split into >=2 lane-aligned tiles so the "parallel" grid axis can
            # shard across v7x's two TensorCores (no-op on v5e/v6e).
            tb = _round_up(pl.cdiv(B, 2), _LANE)
        else:
            tb = B  # single full-extent tile (block dims == array dims)
    return tb


def _matvec_kernel(x_ref, w_ref, b_ref, o_ref):
    """output_dim == 1 specialization with a lane-dense output.

    x_ref: (TB, D) VMEM; w_ref: (1, D) VMEM (PyTorch (O, D) layout, O == 1);
    b_ref: (1,) SMEM scalar; o_ref: (1, TB) VMEM (batch on the lane axis).
    """
    acc = jax.lax.dot_general(
        w_ref[...], x_ref[...],
        dimension_numbers=(((1,), (1,)), ((), ())),       # contract D with D
        preferred_element_type=jnp.float32)                # (1, TB)
    o_ref[...] = (acc + b_ref[0]).astype(o_ref.dtype)


def _matmul_kernel(x_ref, w_ref, b_ref, o_ref):
    """General output_dim path: plain NN MXU matmul.

    x_ref: (TB, D); w_ref: (D, TN) (weight pre-transposed once wrapper-side so
    no per-step relayout in the kernel); b_ref: (1, TN); o_ref: (TB, TN).
    """
    acc = jnp.dot(x_ref[...], w_ref[...], preferred_element_type=jnp.float32)
    o_ref[...] = (acc + b_ref[...]).astype(o_ref.dtype)


def linear_regression_forward(x, weight, bias):
    """Pallas equivalent of nn.Linear(input_dim, output_dim) forward.

    x:      (B, D) float32
    weight: (O, D) float32  (PyTorch layout)
    bias:   (O,)   float32
    returns (B, O) float32
    """
    B, D = x.shape
    O = weight.shape[0]

    capacity = _vmem_capacity_bytes()
    budget = capacity * 3 // 4  # leave headroom for compiler scratch

    cost = pl.CostEstimate(flops=2 * B * D * O, transcendentals=0,
                           bytes_accessed=_F32 * (B * D + O * D + B * O))

    # ------------------------------------------------------------------
    # output_dim == 1 (the module's default): lane-dense (1, B) output.
    # ------------------------------------------------------------------
    if O == 1:
        # Resident (1, D) weight pads to 8 sublanes in VMEM; + bias/slack.
        fixed = 8 * _round_up(D, _LANE) * _F32 + (1 << 12)
        tb = _pick_batch_tile(B, D, out_cols=8, fixed_bytes=fixed,
                              budget=budget)
        nb = pl.cdiv(B, tb)
        used = fixed + tb * (2 * D + 2 * 8) * _F32
        vmem_limit = int(min(capacity, max(2 * used, 32 << 20)))

        out_row = pl.pallas_call(
            _matvec_kernel,
            out_shape=jax.ShapeDtypeStruct((1, B), x.dtype),
            grid=(nb,),
            in_specs=[
                pl.BlockSpec((tb, D), lambda i: (i, 0)),
                # Constant block index -> fetched once; single buffer is enough.
                pl.BlockSpec((1, D), lambda i: (0, 0),
                             pipeline_mode=pl.Buffered(1)),
                pl.BlockSpec(memory_space=pltpu.MemorySpace.SMEM),
            ],
            out_specs=pl.BlockSpec((1, tb), lambda i: (0, i)),
            compiler_params=pltpu.CompilerParams(
                dimension_semantics=("parallel",),
                vmem_limit_bytes=vmem_limit),
            cost_estimate=cost,
        )(x, weight, bias)
        # (1, B) -> (B, 1): same linear order, free metadata reshape.
        return out_row.reshape(B, 1)

    # ------------------------------------------------------------------
    # General output_dim: MXU matmul, weight pre-transposed once to (D, O).
    # ------------------------------------------------------------------
    wt = weight.T                 # one-time HBM transpose outside the kernel
    b2 = bias.reshape(1, O)

    w_bytes = D * O * _F32
    weight_budget = budget // 3
    if w_bytes <= weight_budget:
        tn = O                    # weight fully VMEM-resident
    else:
        # Tile the output dim; 256-aligned (v6e/v7x MXU native tile, and a
        # multiple of v5e's 128).
        # TODO(synk): add a trailing K (reduction over D) grid axis with an
        # f32 accumulator scratch for weights whose (D, tn) slab alone
        # overflows VMEM.
        tn = _round_down(weight_budget // (2 * D * _F32), 256)
        tn = max(tn, 256)
        if tn >= O:
            tn = O
    no = pl.cdiv(O, tn)
    w_buffers = 1 if no == 1 else 2

    fixed = w_buffers * D * tn * _F32 + 2 * 8 * tn * _F32 + (1 << 12)
    tb = _pick_batch_tile(B, D, out_cols=tn, fixed_bytes=fixed, budget=budget)
    nb = pl.cdiv(B, tb)
    used = fixed + tb * (2 * D + 2 * tn) * _F32
    vmem_limit = int(min(capacity, max(2 * used, 32 << 20)))

    # Grid order: stream the operand whose re-fetch would cost more only once.
    if (nb - 1) * O <= (no - 1) * B:
        grid = (nb, no)                       # x read once; weight re-fetched
        x_idx = lambda i, j: (i, 0)
        w_idx = lambda i, j: (0, j)
        o_idx = lambda i, j: (i, j)
    else:
        grid = (no, nb)                       # weight read once; x re-fetched
        x_idx = lambda j, i: (i, 0)
        w_idx = lambda j, i: (0, j)
        o_idx = lambda j, i: (i, j)
    b_idx = w_idx

    w_kwargs = dict(pipeline_mode=pl.Buffered(1)) if no == 1 else {}
    w_spec = pl.BlockSpec((D, tn), w_idx, **w_kwargs)

    return pl.pallas_call(
        _matmul_kernel,
        out_shape=jax.ShapeDtypeStruct((B, O), x.dtype),
        grid=grid,
        in_specs=[
            pl.BlockSpec((tb, D), x_idx),
            w_spec,
            pl.BlockSpec((1, tn), b_idx),
        ],
        out_specs=pl.BlockSpec((tb, tn), o_idx),
        compiler_params=pltpu.CompilerParams(
            dimension_semantics=("parallel", "parallel"),
            vmem_limit_bytes=vmem_limit),
        cost_estimate=cost,
    )(x, wt, b2)


if __name__ == "__main__":
    key = jax.random.PRNGKey(0)
    k_x, k_w, k_b, k_x2, k_w2, k_b2 = jax.random.split(key, 6)

    # --- module default: output_dim == 1 ---
    batch, input_dim, output_dim = 8, 32, 1
    xavier = (6.0 / (input_dim + output_dim)) ** 0.5
    weight = jax.random.uniform(k_w, (output_dim, input_dim), jnp.float32,
                                minval=-xavier, maxval=xavier)
    bbound = 1.0 / (input_dim ** 0.5)
    bias = jax.random.uniform(k_b, (output_dim,), jnp.float32,
                              minval=-bbound, maxval=bbound)
    x = jax.random.normal(k_x, (batch, input_dim), jnp.float32)

    out = jax.block_until_ready(linear_regression_forward(x, weight, bias))
    ref = x @ weight.T + bias
    assert out.shape == (batch, output_dim)
    assert jnp.allclose(out, ref, atol=1e-5, rtol=1e-5)

    # --- also exercise the general output_dim (MXU) path ---
    output_dim2 = 4
    xavier2 = (6.0 / (input_dim + output_dim2)) ** 0.5
    weight2 = jax.random.uniform(k_w2, (output_dim2, input_dim), jnp.float32,
                                 minval=-xavier2, maxval=xavier2)
    bias2 = jax.random.uniform(k_b2, (output_dim2,), jnp.float32,
                               minval=-bbound, maxval=bbound)
    x2 = jax.random.normal(k_x2, (batch, input_dim), jnp.float32)

    out2 = jax.block_until_ready(linear_regression_forward(x2, weight2, bias2))
    ref2 = x2 @ weight2.T + bias2
    assert out2.shape == (batch, output_dim2)
    assert jnp.allclose(out2, ref2, atol=1e-5, rtol=1e-5)

    print("KERNEL_OK")
</pallas_src>

<mosaic_0001>
module attributes {stable_mosaic.version = 11 : i64} {
  func.func @_matvec_kernel(%arg0: i32, %arg1: memref<8x32xf32, #tpu.memory_space<vmem>>, %arg2: memref<1x32xf32, #tpu.memory_space<vmem>>, %arg3: memref<1xf32, #tpu.memory_space<smem>>, %arg4: memref<1x8xf32, #tpu.memory_space<vmem>>) attributes {dimension_semantics = [#tpu.dimension_semantics<parallel>], iteration_bounds = array<i64: 1>, scalar_prefetch = 0 : i64, scratch_operands = 0 : i64, tpu.core_type = #tpu.core_type<tc>, window_params = [{transform_indices = @transform_0, window_bounds = array<i64: 8, 32>}, {pipeline_mode = #tpu.pipeline_mode<synchronous>, transform_indices = @transform_1, window_bounds = array<i64: 1, 32>}, {transform_indices = @transform_2, window_bounds = array<i64: 1>}, {transform_indices = @transform_3, window_bounds = array<i64: 1, 8>}]} {
    %c0 = arith.constant 0 : index
    %c0_0 = arith.constant 0 : index
    %0 = vector.load %arg2[%c0, %c0_0] : memref<1x32xf32, #tpu.memory_space<vmem>>, vector<1x32xf32>
    %c0_1 = arith.constant 0 : index
    %c0_2 = arith.constant 0 : index
    %1 = vector.load %arg1[%c0_1, %c0_2] : memref<8x32xf32, #tpu.memory_space<vmem>>, vector<8x32xf32>
    %cst = arith.constant dense<0.000000e+00> : vector<1x8xf32>
    %2 = tpu.matmul %0, %1, %cst {dimension_numbers = #tpu.dot_dimension_numbers<[1], [1], [0], [0], [0, 0, 1, 0], [], []>} : vector<1x32xf32>, vector<8x32xf32>, vector<1x8xf32> -> vector<1x8xf32>
    %c0_3 = arith.constant 0 : index
    %3 = memref.load %arg3[%c0_3] : memref<1xf32, #tpu.memory_space<smem>>
    %4 = vector.broadcast %3 : f32 to vector<1x8xf32>
    %5 = arith.addf %2, %4 : vector<1x8xf32>
    %c0_4 = arith.constant 0 : index
    %c0_5 = arith.constant 0 : index
    %6 = vector.load %arg4[%c0_4, %c0_5] : memref<1x8xf32, #tpu.memory_space<vmem>>, vector<1x8xf32>
    tpu.vector_store %arg4[%c0_4, %c0_5], %5 {strides = array<i32>} : memref<1x8xf32, #tpu.memory_space<vmem>>, vector<1x8xf32>,
    return
  }
  func.func @transform_0(%arg0: i32) -> (i32, i32) {
    %c0_i32 = arith.constant 0 : i32
    %c0_i32_0 = arith.constant 0 : i32
    return %arg0, %c0_i32 : i32, i32
  }
  func.func @transform_1(%arg0: i32) -> (i32, i32) {
    %c0_i32 = arith.constant 0 : i32
    %c0_i32_0 = arith.constant 0 : i32
    %c0_i32_1 = arith.constant 0 : i32
    return %c0_i32, %c0_i32_0 : i32, i32
  }
  func.func @transform_2(%arg0: i32) -> i32 {
    %c0_i32 = arith.constant 0 : i32
    %c0_i32_0 = arith.constant 0 : i32
    return %c0_i32 : i32
  }
  func.func @transform_3(%arg0: i32) -> (i32, i32) {
    %c0_i32 = arith.constant 0 : i32
    %c0_i32_0 = arith.constant 0 : i32
    return %c0_i32, %arg0 : i32, i32
  }
}

</mosaic_0001>

<bundles_post_ra>
// kernel: tpu_custom_call.1
= control target key start
LH: loop header
LB: loop body
LE: loop exit
PB: predicated region body
PF: predicated region fallthrough
CT: control target
= control target key end

     0   :  { %9 = vsyncpa [#allocation4], 0  ;;  %s170_s0 = inlined_call_operand.hbm [shape: f32[8,32], index: 0, kind: input, shape index: {}]   ;;  %s171_s1 = inlined_call_operand.vmem [shape: f32[1,32], index: 1, kind: input, shape index: {}]   ;;  %s172_s2 = inlined_call_operand.<no memory space> [shape: f32[1], index: 2, kind: input, shape index: {}]   ;;  %s173_s3 = inlined_call_operand.hbm [shape: f32[1,8], index: 3, kind: output, shape index: {}]  }
   0x1   :  { %10 = vsyncpa [#allocation5], 0  ;;  %s16_s14 = sshll.u32 %s170_s0, 4  ;;  %s136_s15 = smov [#allocation3]   ;;  %s17_s14 = int_to_ptr.hbm [resolvable:$true] %s16_s14 }
   0x2   :  { %s18_s16 = sshll.u32 %s136_s15, 4  ;;  %s19_s16 = int_to_ptr.vmem [resolvable:$true] %s18_s16 }
   0x3   :  { %21 = dma.hbm_to_vmem [thread:$0]  %s17_s14, 128, %s19_s16, [#allocation4]  }
   0x4   :  { %132 = dma.done.wait [#allocation4], 128  }
   0x5   :  { %133 = vsyncadd [#allocation4], 4294967168  ;;  %vm34_vm0 = vcmask 261120   ;;  %v31_v0 = vld [vmem:[#allocation3] sm:$0xff]  ;;  %v33_v2 = vstv %s172_s2  ;;  %s137_s0 = smov [#allocation6]   ;;  %s70_s24 = sshll.u32 %s173_s3, 4  ;;  %s71_s24 = int_to_ptr.hbm [resolvable:$true] %s70_s24 }
   0x6   :  { %80 = vmatpush.xpose.msk.msra.mxu0 %vm34_vm0, %v31_v0  ;;  %v30_v1 = vld [vmem:[%s171_s1] sm:$0x1]  ;;  %s68_s21 = sshll.u32 %s137_s0, 4  ;;  %vm61_vm1 = vcmask 57344   ;;  %s69_s21 = int_to_ptr.vmem [resolvable:$true] %s68_s21 }
   0x9   :  { %81 = vmatmul.msk.f32.vlgmr.msra.gmra.mxu0 %vm34_vm0, %v30_v1 }
  0x86   :  { %v58_v3 = vpop.f32.mrf.mxu0 }
  0x87   :  { %v59_v4 = vadd.f32 %v58_v3, %v33_v2 }
  0x89   :  { %62 = vst.msk [vmem:[#allocation6] sm:$0x1] %vm61_vm1, %v59_v4 }
  0x8a   :  { %73 = dma.vmem_to_hbm [thread:$0]  %s69_s21, 16, %s71_s24, [#allocation5]  }
  0x8b   :  { %134 = dma.done.wait [#allocation5], 16  }
  0x8c   :  { %135 = vsyncadd [#allocation5], 4294967280 }
  0x8d   :  { %78 = vsyncpa [#allocation4], 1 }
  0x8e   :  { %79 = vsyncpa [#allocation5], 1 }

</bundles_post_ra>
